<compile_context>
chip_gen: v7x
topology: tpu7x:2x2x1
jax: 0.10.0
libtpu: 0.0.40
codegen_flags: <defaults>
</compile_context>

<pallas_src>
import jax
import jax.numpy as jnp
from jax.experimental import pallas as pl
from jax.experimental.pallas import tpu as pltpu


def _policy_net_kernel(x_ref, w1t_ref, b1_ref, w2t_ref, b2_ref, o_ref):
    # fc1: (TB, obs) @ (obs, hidden) -- weights already transposed in wrapper.
    h = jnp.dot(x_ref[...], w1t_ref[...], preferred_element_type=jnp.float32)
    h = jnp.maximum(h + b1_ref[...], 0.0)                     # bias + ReLU in f32
    # fc2: (TB, hidden) @ (hidden, act_pad)
    y = jnp.dot(h.astype(w2t_ref.dtype), w2t_ref[...],
                preferred_element_type=jnp.float32)
    o_ref[...] = jax.nn.sigmoid(y + b2_ref[...]).astype(o_ref.dtype)


def policy_net_forward(x, w1, b1, w2, b2, *, tile_b=512, use_bf16=False):
    """Fused MLP forward: sigmoid(relu(x @ w1.T + b1) @ w2.T + b2).

    x:  (batch, obs_dim)
    w1: (hidden_dim, obs_dim)   b1: (hidden_dim,)     [PyTorch Linear layout]
    w2: (action_dim, hidden_dim) b2: (action_dim,)
    """
    batch, obs_dim = x.shape
    hidden_dim = w1.shape[0]
    action_dim = w2.shape[0]

    mm_dtype = jnp.bfloat16 if use_bf16 else jnp.float32

    # Pre-transpose once in the wrapper: no in-kernel transpose work.
    w1t = w1.T.astype(mm_dtype)                 # (obs_dim, hidden_dim)
    w2t = w2.T                                  # (hidden_dim, action_dim)

    # Lane-dense output: pad action dim to a multiple of 128 (>= 128) so the
    # output store is unmasked; slice back afterwards.
    act_pad = max(128, pl.cdiv(action_dim, 128) * 128)
    if act_pad != action_dim:
        w2t = jnp.pad(w2t, ((0, 0), (0, act_pad - action_dim)))
        b2 = jnp.pad(b2, (0, act_pad - action_dim))
    w2t = w2t.astype(mm_dtype)

    b1_2d = b1.reshape(1, hidden_dim).astype(jnp.float32)
    b2_2d = b2.reshape(1, act_pad).astype(jnp.float32)

    # Batch tiling: round the tile to a sublane multiple, pad batch to fit.
    # (tile_b=512 keeps per-tile VMEM use tiny even on v7x's smaller VMEM.)
    tile_b = max(8, (min(tile_b, batch) // 8) * 8)
    padded_batch = pl.cdiv(batch, tile_b) * tile_b
    x_mm = x.astype(mm_dtype)
    if padded_batch != batch:
        x_mm = jnp.pad(x_mm, ((0, padded_batch - batch), (0, 0)))
    num_tiles = padded_batch // tile_b

    out_shape = jax.ShapeDtypeStruct((padded_batch, act_pad), jnp.float32)

    if num_tiles == 1:
        # Overhead-dominated single block: no grid, no pipeline machinery,
        # everything placed directly in VMEM.
        out = pl.pallas_call(
            _policy_net_kernel,
            out_shape=out_shape,
            in_specs=[pl.BlockSpec(memory_space=pltpu.MemorySpace.VMEM)] * 5,
            out_specs=pl.BlockSpec(memory_space=pltpu.MemorySpace.VMEM),
        )(x_mm, w1t, b1_2d, w2t, b2_2d)
    else:
        # Batch grid: weights/biases map to the same block every step, so they
        # stay VMEM-resident; activation rows stream.  Batch axis is
        # "parallel" so it shards across both TensorCores on v7x.
        out = pl.pallas_call(
            _policy_net_kernel,
            out_shape=out_shape,
            grid_spec=pltpu.PrefetchScalarGridSpec(
                num_scalar_prefetch=0,
                grid=(num_tiles,),
                in_specs=[
                    pl.BlockSpec((tile_b, obs_dim), lambda i: (i, 0)),
                    pl.BlockSpec((obs_dim, hidden_dim), lambda i: (0, 0)),
                    pl.BlockSpec((1, hidden_dim), lambda i: (0, 0)),
                    pl.BlockSpec((hidden_dim, act_pad), lambda i: (0, 0)),
                    pl.BlockSpec((1, act_pad), lambda i: (0, 0)),
                ],
                out_specs=pl.BlockSpec((tile_b, act_pad), lambda i: (i, 0)),
            ),
            compiler_params=pltpu.CompilerParams(
                dimension_semantics=("parallel",),
            ),
        )(x_mm, w1t, b1_2d, w2t, b2_2d)

    return out[:batch, :action_dim].astype(x.dtype)


def init_params(key, obs_dim, hidden_dim, action_dim):
    """Deterministic PyTorch-style (uniform +/- 1/sqrt(fan_in)) init."""
    k1, k2, k3, k4 = jax.random.split(key, 4)
    bound1 = 1.0 / jnp.sqrt(obs_dim)
    bound2 = 1.0 / jnp.sqrt(hidden_dim)
    w1 = jax.random.uniform(k1, (hidden_dim, obs_dim), jnp.float32, -bound1, bound1)
    b1 = jax.random.uniform(k2, (hidden_dim,), jnp.float32, -bound1, bound1)
    w2 = jax.random.uniform(k3, (action_dim, hidden_dim), jnp.float32, -bound2, bound2)
    b2 = jax.random.uniform(k4, (action_dim,), jnp.float32, -bound2, bound2)
    return w1, b1, w2, b2


def _reference(x, w1, b1, w2, b2):
    h = jnp.maximum(x @ w1.T + b1, 0.0)
    return jax.nn.sigmoid(h @ w2.T + b2)


if __name__ == "__main__":
    # Module spec: hidden_dim = 128; pick small obs/action dims.
    obs_dim, hidden_dim, action_dim = 16, 128, 4

    key = jax.random.PRNGKey(0)
    kx, kp, kx2 = jax.random.split(key, 3)
    w1, b1, w2, b2 = init_params(kp, obs_dim, hidden_dim, action_dim)

    # 1) Small batch: exercises the gridless single-block path (f32).
    x_small = jax.random.normal(kx, (8, obs_dim), jnp.float32)
    out_small = jax.block_until_ready(policy_net_forward(x_small, w1, b1, w2, b2))
    ref_small = _reference(x_small, w1, b1, w2, b2)
    assert out_small.shape == (8, action_dim)
    assert jnp.allclose(out_small, ref_small, atol=1e-5, rtol=1e-5)

    # 2) Larger batch (non-multiple of tile): exercises the batch-tiled,
    #    weight-resident, parallel-grid path (f32).
    x_big = jax.random.normal(kx2, (200, obs_dim), jnp.float32)
    out_big = jax.block_until_ready(
        policy_net_forward(x_big, w1, b1, w2, b2, tile_b=64))
    ref_big = _reference(x_big, w1, b1, w2, b2)
    assert out_big.shape == (200, action_dim)
    assert jnp.allclose(out_big, ref_big, atol=1e-5, rtol=1e-5)

    # 3) bf16 matmuls (f32 accumulation / elementwise) for v6e/v7x throughput.
    out_bf16 = jax.block_until_ready(
        policy_net_forward(x_big, w1, b1, w2, b2, tile_b=64, use_bf16=True))
    assert out_bf16.shape == (200, action_dim)
    assert jnp.allclose(out_bf16, ref_big, atol=2e-2, rtol=2e-2)

    print("KERNEL_OK")
</pallas_src>

<mosaic_0001>
module attributes {stable_mosaic.version = 11 : i64} {
  func.func @_policy_net_kernel(%arg0: memref<8x16xf32, #tpu.memory_space<vmem>>, %arg1: memref<16x128xf32, #tpu.memory_space<vmem>>, %arg2: memref<1x128xf32, #tpu.memory_space<vmem>>, %arg3: memref<128x128xf32, #tpu.memory_space<vmem>>, %arg4: memref<1x128xf32, #tpu.memory_space<vmem>>, %arg5: memref<8x128xf32, #tpu.memory_space<vmem>>) attributes {dimension_semantics = [], scalar_prefetch = 0 : i64, scratch_operands = 0 : i64, tpu.core_type = #tpu.core_type<tc>} {
    %c0 = arith.constant 0 : index
    %c0_0 = arith.constant 0 : index
    %0 = vector.load %arg0[%c0, %c0_0] : memref<8x16xf32, #tpu.memory_space<vmem>>, vector<8x16xf32>
    %c0_1 = arith.constant 0 : index
    %c0_2 = arith.constant 0 : index
    %1 = vector.load %arg1[%c0_1, %c0_2] : memref<16x128xf32, #tpu.memory_space<vmem>>, vector<16x128xf32>
    %cst = arith.constant dense<0.000000e+00> : vector<8x128xf32>
    %2 = tpu.matmul %0, %1, %cst {dimension_numbers = #tpu.dot_dimension_numbers<[1], [0], [0], [1], [0, 0, 1, 1], [], []>} : vector<8x16xf32>, vector<16x128xf32>, vector<8x128xf32> -> vector<8x128xf32>
    %c0_3 = arith.constant 0 : index
    %c0_4 = arith.constant 0 : index
    %3 = vector.load %arg2[%c0_3, %c0_4] : memref<1x128xf32, #tpu.memory_space<vmem>>, vector<1x128xf32>
    %4 = vector.broadcast %3 : vector<1x128xf32> to vector<8x128xf32>
    %5 = arith.addf %2, %4 : vector<8x128xf32>
    %cst_5 = arith.constant 0.000000e+00 : f32
    %6 = vector.broadcast %cst_5 : f32 to vector<8x128xf32>
    %7 = arith.maximumf %5, %6 : vector<8x128xf32>
    %c0_6 = arith.constant 0 : index
    %c0_7 = arith.constant 0 : index
    %8 = vector.load %arg3[%c0_6, %c0_7] : memref<128x128xf32, #tpu.memory_space<vmem>>, vector<128x128xf32>
    %cst_8 = arith.constant dense<0.000000e+00> : vector<8x128xf32>
    %9 = tpu.matmul %7, %8, %cst_8 {dimension_numbers = #tpu.dot_dimension_numbers<[1], [0], [0], [1], [0, 0, 1, 1], [], []>} : vector<8x128xf32>, vector<128x128xf32>, vector<8x128xf32> -> vector<8x128xf32>
    %c0_9 = arith.constant 0 : index
    %c0_10 = arith.constant 0 : index
    %10 = vector.load %arg4[%c0_9, %c0_10] : memref<1x128xf32, #tpu.memory_space<vmem>>, vector<1x128xf32>
    %11 = vector.broadcast %10 : vector<1x128xf32> to vector<8x128xf32>
    %12 = arith.addf %9, %11 : vector<8x128xf32>
    %13 = arith.negf %12 : vector<8x128xf32>
    %14 = math.exp %13 : vector<8x128xf32>
    %cst_11 = arith.constant 1.000000e+00 : f32
    %15 = vector.broadcast %cst_11 : f32 to vector<8x128xf32>
    %16 = arith.addf %15, %14 : vector<8x128xf32>
    %17 = arith.divf %15, %16 : vector<8x128xf32>
    %c0_12 = arith.constant 0 : index
    %c0_13 = arith.constant 0 : index
    %18 = vector.load %arg5[%c0_12, %c0_13] : memref<8x128xf32, #tpu.memory_space<vmem>>, vector<8x128xf32>
    tpu.vector_store %arg5[%c0_12, %c0_13], %17 {strides = array<i32>} : memref<8x128xf32, #tpu.memory_space<vmem>>, vector<8x128xf32>,
    return
  }
}

</mosaic_0001>

<bundles_post_ra>
// kernel: tpu_custom_call.1
= control target key start
LH: loop header
LB: loop body
LE: loop exit
PB: predicated region body
PF: predicated region fallthrough
CT: control target
= control target key end

     0   :  { %10 = vsyncpa [#allocation3], 0  ;;  %s560_s0 = inlined_call_operand.hbm [shape: f32[8,16], index: 0, kind: input, shape index: {}]   ;;  %s561_s1 = inlined_call_operand.hbm [shape: f32[16,128], index: 1, kind: input, shape index: {}]   ;;  %s562_s2 = inlined_call_operand.vmem [shape: f32[1,128], index: 2, kind: input, shape index: {}]   ;;  %s563_s3 = inlined_call_operand.hbm [shape: f32[128,128], index: 3, kind: input, shape index: {}]   ;;  %s564_s4 = inlined_call_operand.vmem [shape: f32[1,128], index: 4, kind: input, shape index: {}]   ;;  %s565_s5 = inlined_call_operand.hbm [shape: f32[8,128], index: 5, kind: output, shape index: {}]  }
   0x1   :  { %11 = vsyncpa [#allocation6], 0 }
   0x2   :  { %12 = vsyncpa [#allocation4], 0  ;;  %s461_s18 = smov [#allocation5]   ;;  %s367_s22 = scalar_lea.hbm %s561_s1, 256 }
   0x3   :  { %s28_s19 = sshll.u32 %s461_s18, 4  ;;  %p368_p0 = scmp.ne.s32.totalorder %s561_s1, %s367_s22  ;;  %s29_s19 = int_to_ptr.vmem [resolvable:$true] %s28_s19 }
   0x4   :  { %p371_p1 = scmp.lt.u32.totalorder %s367_s22, %s561_s1 }
   0x6   :  { %p373_p2 = pnand %p371_p1, %p368_p0 }
   0x8   :  { %376 = shalt.err (!%p373_p2)
}
   0x9   :  { %s377_s27 = scalar_lea.vmem %s29_s19, 256  ;;  %p382_p4 = scmp.lt.s32.totalorder %s29_s19, %s29_s19 }
   0xa   :  { %p378_p3 = scmp.ne.s32.totalorder %s29_s19, %s377_s27  ;;  %p383_p5 = scmp.lt.s32.totalorder %s377_s27, %s377_s27 }
   0xc   :  { %p384_p6 = por %p383_p5, %p382_p4 }
   0xe   :  { %p385_p7 = pnand %p384_p6, %p378_p3 }
  0x10   :  { %388 = shalt.err (!%p385_p7)
}
  0x11   :  { %s462_s28 = smov 128   ;;  %s463_s29 = smov 8  }
  0x12   :  { %34 = dma.hbm_to_vmem [thread:$0]  %s561_s1, 256, %s29_s19, [#allocation6], %s462_s28, %s462_s28, %s463_s29  }
  0x13   :  { %s464_s7 = smov [#allocation2]   ;;  %s465_s9 = smov [#allocation7]  }
  0x14   :  { %s19_s8 = sshll.u32 %s464_s7, 4  ;;  %s42_s10 = sshll.u32 %s465_s9, 4  ;;  %s20_s8 = int_to_ptr.vmem [resolvable:$true] %s19_s8  ;;  %s43_s10 = int_to_ptr.vmem [resolvable:$true] %s42_s10 }
  0x15   :  { %s389_s13 = scalar_lea.hbm %s560_s0, 128 }
  0x16   :  { %p390_p8 = scmp.ne.s32.totalorder %s560_s0, %s389_s13  ;;  %p393_p9 = scmp.lt.u32.totalorder %s389_s13, %s560_s0 }
  0x18   :  { %p395_p10 = pnand %p393_p9, %p390_p8 }
  0x1a   :  { %398 = shalt.err (!%p395_p10)
}
  0x1b   :  { %s399_s1 = scalar_lea.vmem %s20_s8, 128  ;;  %p404_p12 = scmp.lt.s32.totalorder %s20_s8, %s20_s8 }
  0x1c   :  { %p400_p11 = scmp.ne.s32.totalorder %s20_s8, %s399_s1  ;;  %p405_p13 = scmp.lt.s32.totalorder %s399_s1, %s399_s1 }
  0x1e   :  { %p406_p0 = por %p405_p13, %p404_p12 }
  0x20   :  { %p407_p1 = pnand %p406_p0, %p400_p11 }
  0x22   :  { %410 = shalt.err (!%p407_p1)
}
  0x23   :  { %22 = dma.hbm_to_vmem [thread:$0]  %s560_s0, 128, %s20_s8, [#allocation3]  }
  0x24   :  { %s411_s22 = scalar_lea.hbm %s563_s3, 2048 }
  0x25   :  { %p412_p2 = scmp.ne.s32.totalorder %s563_s3, %s411_s22  ;;  %p415_p3 = scmp.lt.u32.totalorder %s411_s22, %s563_s3 }
  0x27   :  { %p417_p4 = pnand %p415_p3, %p412_p2 }
  0x29   :  { %420 = shalt.err (!%p417_p4)
}
  0x2a   :  { %s421_s27 = scalar_lea.vmem %s43_s10, 2048  ;;  %p426_p6 = scmp.lt.s32.totalorder %s43_s10, %s43_s10 }
  0x2b   :  { %p422_p5 = scmp.ne.s32.totalorder %s43_s10, %s421_s27  ;;  %p427_p7 = scmp.lt.s32.totalorder %s421_s27, %s421_s27 }
  0x2d   :  { %p428_p8 = por %p427_p7, %p426_p6 }
  0x2f   :  { %p429_p9 = pnand %p428_p8, %p422_p5 }
  0x31   :  { %432 = shalt.err (!%p429_p9)
}
  0x32   :  { %48 = dma.hbm_to_vmem [thread:$0]  %s563_s3, 2048, %s43_s10, [#allocation6], %s462_s28, %s462_s28, %s463_s29  }
  0x33   :  { %455 = dma.done.wait [#allocation3], 128  }
  0x34   :  { %456 = vsyncadd [#allocation3], 4294967168 }
  0x35   :  { %457 = dma.done.wait [#allocation6], 2304  }
  0x36   :  { %458 = vsyncadd [#allocation6], 4294964992  ;;  %v466_v0 = vmov 0.0|0.0   ;;  %vm467_vm0 = vmmov 0   ;;  %v468_v1 = vmov 0.0   ;;  %v61_v2 = vld [vmem:[#allocation5] sm:$0xff] }
  0x37   :  { %327 = vmatprep.subr.bf16.mxu0 %v466_v0  ;;  %289 = vmatprep.mubr.msk.f32.mxu0 %vm467_vm0, %v468_v1  ;;  %v62_v3 = vld [vmem:[#allocation5 + $0x8] sm:$0xff]  ;;  %v145_v5 = vld [vmem:[#allocation7] sm:$0xff]  ;;  %v146_v6 = vld [vmem:[#allocation7 + $0x8] sm:$0xff]  ;;  %vm70_vm1 = vcmask 130048   ;;  %s469_s7 = smov [#allocation8]  }
  0x38   :  { %330 = vmatprep.subr.bf16.mxu1 %v466_v0  ;;  %324 = vmatprep.mubr.msk.f32.mxu1 %vm467_vm0, %v468_v1  ;;  %v328_v4 = vpack.c.bf16 %v62_v3, %v61_v2  ;;  %v147_v7 = vld [vmem:[#allocation7 + $0x10] sm:$0xff]  ;;  %v331_v8 = vpack.c.bf16 %v146_v6, %v145_v5  ;;  %v148_v9 = vld [vmem:[#allocation7 + $0x18] sm:$0xff]  ;;  %v60_v10 = vld [vmem:[#allocation2] sm:$0xff]  ;;  %s251_s8 = sshll.u32 %s469_s7, 4  ;;  %s252_s8 = int_to_ptr.vmem [resolvable:$true] %s251_s8 }
  0x39   :  { %v334_v11 = vpack.c.bf16 %v148_v9, %v147_v7  ;;  %v149_v12 = vld [vmem:[#allocation7 + $0x20] sm:$0xff]  ;;  %v150_v13 = vld [vmem:[#allocation7 + $0x28] sm:$0xff]  ;;  %v151_v15 = vld [vmem:[#allocation7 + $0x30] sm:$0xff]  ;;  %p438_p11 = scmp.lt.s32.totalorder %s252_s8, %s252_s8 }
  0x3a   :  { %329 = vmatpush3.bf16.msra.mxu0 %v328_v4  ;;  %332 = vmatpush3.bf16.msra.mxu1 %v331_v8  ;;  %v337_v14 = vpack.c.bf16 %v150_v13, %v149_v12  ;;  %v152_v16 = vld [vmem:[#allocation7 + $0x38] sm:$0xff]  ;;  %v153_v18 = vld [vmem:[#allocation7 + $0x40] sm:$0xff]  ;;  %v154_v19 = vld [vmem:[#allocation7 + $0x48] sm:$0xff] }
  0x3b   :  { %333 = vmatprep.subr.bf16.mxu1 %v466_v0  ;;  %v340_v17 = vpack.c.bf16 %v152_v16, %v151_v15  ;;  %v343_v20 = vpack.c.bf16 %v154_v19, %v153_v18  ;;  %v155_v21 = vld [vmem:[#allocation7 + $0x50] sm:$0xff]  ;;  %v156_v22 = vld [vmem:[#allocation7 + $0x58] sm:$0xff]  ;;  %v157_v24 = vld [vmem:[#allocation7 + $0x60] sm:$0xff] }
  0x3c   :  { %v346_v23 = vpack.c.bf16 %v156_v22, %v155_v21  ;;  %v158_v25 = vld [vmem:[#allocation7 + $0x68] sm:$0xff]  ;;  %v159_v27 = vld [vmem:[#allocation7 + $0x70] sm:$0xff]  ;;  %v160_v28 = vld [vmem:[#allocation7 + $0x78] sm:$0xff] }
  0x3d   :  { %290 = vmatmul.mubr.msk.f32.vlgmr.msra.gmra.mrb[0].mxu0 %vm70_vm1, %v60_v10  ;;  %v349_v26 = vpack.c.bf16 %v158_v25, %v157_v24  ;;  %v352_v29 = vpack.c.bf16 %v160_v28, %v159_v27  ;;  %v261_v30 = vld [vmem:[%s562_s2] ss:$0 sm:$0xff]  ;;  %s433_s2 = scalar_lea.vmem %s252_s8, 128 }
  0x3e   :  { %335 = vmatpush3.bf16.msra.mxu1 %v334_v11  ;;  %v263_v35 = vld [vmem:[%s564_s4] ss:$0 sm:$0xff]  ;;  %p434_p10 = scmp.ne.s32.totalorder %s252_s8, %s433_s2  ;;  %p439_p12 = scmp.lt.s32.totalorder %s433_s2, %s433_s2 }
  0x3f   :  { %336 = vmatprep.subr.bf16.mxu1 %v466_v0 }
  0x40   :  { %p440_p13 = por %p439_p12, %p438_p11 }
  0x42   :  { %338 = vmatpush3.bf16.msra.mxu1 %v337_v14  ;;  %p441_p0 = pnand %p440_p13, %p434_p10 }
  0x43   :  { %339 = vmatprep.subr.bf16.mxu1 %v466_v0 }
  0x46   :  { %341 = vmatpush3.bf16.msra.mxu1 %v340_v17 }
  0x47   :  { %342 = vmatprep.subr.bf16.mxu1 %v466_v0 }
  0x4a   :  { %344 = vmatpush3.bf16.msra.mxu1 %v343_v20 }
  0x4b   :  { %345 = vmatprep.subr.bf16.mxu1 %v466_v0 }
  0x4e   :  { %347 = vmatpush3.bf16.msra.mxu1 %v346_v23 }
  0x4f   :  { %348 = vmatprep.subr.bf16.mxu1 %v466_v0 }
  0x52   :  { %350 = vmatpush3.bf16.msra.mxu1 %v349_v26 }
  0x53   :  { %351 = vmatprep.subr.bf16.mxu1 %v466_v0 }
  0x56   :  { %353 = vmatpush3.bf16.msra.mxu1 %v352_v29 }
 0x110   :  { %v140_v31 = vpop.f32.mrb[0].mxu0 }
 0x111   :  { %v141_v32 = vadd.f32 %v261_v30, %v140_v31  ;;  %v291_v33 = vpop.f32.mrb[1].mxu0 }
 0x113   :  { %v144_v34 = vmax.f32 %v141_v32, 0.0 }
 0x115   :  { %325 = vmatmul.mubr.f32.vlgmr.msra.gmra.mrb[0].mxu1 %v144_v34 }
 0x1e8   :  { %v234_v36 = vpop.f32.mrb[0].mxu1 }
 0x1e9   :  { %v235_v37 = vadd.f32 %v263_v35, %v234_v36  ;;  %v326_v38 = vpop.f32.mrb[1].mxu1 }
 0x1eb   :  { %v264_v39 = vmul.f32 -1.442695, %v235_v37 }
 0x1ed   :  { %363 = vpow2.f32 %v264_v39 }
 0x1f7   :  { %v364_v40 = vpop.eup %363 }
 0x1f8   :  { %v241_v41 = vadd.f32 1.0, %v364_v40 }
 0x1fa   :  { %365 = vrcp.f32 %v241_v41 }
 0x204   :  { %v366_v42 = vpop.eup %365 }
 0x205   :  { %244 = vst [vmem:[#allocation8] sm:$0xff] %v366_v42 }
 0x206   :  { %444 = shalt.err (!%p441_p0)
}
 0x207   :  { %s445_s10 = scalar_lea.hbm %s565_s5, 128 }
 0x208   :  { %p446_p1 = scmp.ne.s32.totalorder %s565_s5, %s445_s10  ;;  %p449_p2 = scmp.lt.u32.totalorder %s445_s10, %s565_s5 }
 0x20a   :  { %p451_p3 = pnand %p449_p2, %p446_p1 }
 0x20c   :  { %454 = shalt.err (!%p451_p3)
}
 0x20d   :  { %254 = dma.vmem_to_hbm [thread:$0]  %s252_s8, 128, %s565_s5, [#allocation4]  }
 0x20e   :  { %459 = dma.done.wait [#allocation4], 128  }
 0x20f   :  { %460 = vsyncadd [#allocation4], 4294967168 }
 0x210   :  { %258 = vsyncpa [#allocation3], 1 }
 0x211   :  { %259 = vsyncpa [#allocation6], 1 }
 0x212   :  { %260 = vsyncpa [#allocation4], 1 }

</bundles_post_ra>
